<compile_context>
chip_gen: v7x
topology: tpu7x:2x2x1
jax: 0.10.0
libtpu: 0.0.40
codegen_flags: <defaults>
</compile_context>

<pallas_src>
import jax
import jax.numpy as jnp
from jax.experimental import pallas as pl
from jax.experimental.pallas import tpu as pltpu


def _cond_embed_kernel(mask_ref, emb_ref, out_ref):
    # mask_ref: (TM, 1), emb_ref: (1, TD), out_ref: (TM, TD)
    # Pure VPU broadcast multiply; full-width lane-dense store.
    out_ref[...] = mask_ref[...] * emb_ref[...]


def _round_up(x, m):
    return ((x + m - 1) // m) * m


def condition_embed(condition_mask, condition_embedding):
    """condition_mask: (B, T, 1); condition_embedding: (1, 1, D).

    Returns (B, T, D) f32, matching the PyTorch forward exactly.
    """
    B, T, _ = condition_mask.shape
    D = condition_embedding.shape[-1]
    rows = B * T

    # ---- tile selection (no padding: cdiv grid + masked tails) ----------
    TARGET_OUT_TILE = 4 << 20     # ~4 MiB output tile per grid step
    MAX_FULL_D = 16384            # above this, tile D instead of taking it whole

    if D <= MAX_FULL_D:
        # Full-D block: exempt from the 128-lane rule, one contiguous
        # writeback per tile, D grid axis collapses to 1.
        td = D
    else:
        # Large D: 2048-wide (multiple of 128) blocks; cdiv grid masks the
        # tail block even if D is not a multiple of 128.
        td = 2048

    if rows < 8:
        # Full-dim row block (exempt from the 8-sublane rule).
        tm = rows
    else:
        # Rows per tile so the output tile is ~TARGET_OUT_TILE; multiple of 8.
        tm = (TARGET_OUT_TILE // (td * 4)) // 8 * 8
        tm = max(8, min(2048, tm))            # cap: lane-padded mask <= 2 MiB (2 bufs)
        tm = min(tm, _round_up(rows, 8))      # don't exceed the problem
        # v7x: keep >=2 blocks on a "parallel" axis so both TensorCores get work.
        if pl.cdiv(D, td) == 1 and rows >= 16:
            tm = min(tm, _round_up(pl.cdiv(rows, 2), 8))

    grid = (pl.cdiv(rows, tm), pl.cdiv(D, td))

    mask2d = condition_mask.reshape(rows, 1).astype(jnp.float32)
    emb2d = condition_embedding.reshape(1, D).astype(jnp.float32)

    out2d = pl.pallas_call(
        _cond_embed_kernel,
        out_shape=jax.ShapeDtypeStruct((rows, D), jnp.float32),
        grid_spec=pltpu.PrefetchScalarGridSpec(
            num_scalar_prefetch=0,
            grid=grid,
            in_specs=[
                # (tm, 1) mask slab per row-block; resident across D-blocks.
                pl.BlockSpec((tm, 1), lambda i, j: (i, 0)),
                # (1, td) embedding slab per D-block; resident across row-blocks.
                pl.BlockSpec((1, td), lambda i, j: (0, j)),
            ],
            out_specs=pl.BlockSpec((tm, td), lambda i, j: (i, j)),
        ),
        compiler_params=pltpu.CompilerParams(
            dimension_semantics=("parallel", "parallel"),
        ),
        cost_estimate=pl.CostEstimate(
            flops=rows * D,
            transcendentals=0,
            bytes_accessed=rows * D * 4 + rows * 4 + D * 4,
        ),
    )(mask2d, emb2d)

    return out2d.reshape(B, T, D)


if __name__ == "__main__":
    key = jax.random.PRNGKey(0)
    k_emb, k_mask = jax.random.split(key)

    B, T, D = 2, 8, 32

    # Deterministic parameter init, mirroring torch.randn(1,1,D) * 0.5
    condition_embedding = 0.5 * jax.random.normal(k_emb, (1, 1, D), dtype=jnp.float32)

    # condition_mask: binary per (batch, position), shape (B, T, 1)
    condition_mask = (
        jax.random.uniform(k_mask, (B, T, 1)) > 0.5
    ).astype(jnp.float32)

    out = condition_embed(condition_mask, condition_embedding)
    out = jax.block_until_ready(out)

    # Reference check (pure JAX, same broadcast semantics as PyTorch)
    ref = jnp.broadcast_to(condition_embedding * condition_mask, (B, T, D))
    assert out.shape == (B, T, D)
    assert jnp.allclose(out, ref, atol=1e-6), "mismatch vs reference"

    # Larger, non-divisible shape: rows=1035 (not a tile multiple), D=1152.
    # Exercises the cdiv grid with a masked row tail and a full-D tile.
    B2, T2, D2 = 3, 345, 1152
    emb2 = 0.5 * jax.random.normal(k_emb, (1, 1, D2), dtype=jnp.float32)
    mask2 = (jax.random.uniform(k_mask, (B2, T2, 1)) > 0.5).astype(jnp.float32)
    out2 = jax.block_until_ready(condition_embed(mask2, emb2))
    ref2 = jnp.broadcast_to(emb2 * mask2, (B2, T2, D2))
    assert jnp.allclose(out2, ref2, atol=1e-6), "mismatch vs reference (large)"

    # Non-128-multiple D with a tiny row count (full-dim blocks on both axes).
    B3, T3, D3 = 1, 5, 200
    emb3 = 0.5 * jax.random.normal(k_emb, (1, 1, D3), dtype=jnp.float32)
    mask3 = (jax.random.uniform(k_mask, (B3, T3, 1)) > 0.5).astype(jnp.float32)
    out3 = jax.block_until_ready(condition_embed(mask3, emb3))
    ref3 = jnp.broadcast_to(emb3 * mask3, (B3, T3, D3))
    assert jnp.allclose(out3, ref3, atol=1e-6), "mismatch vs reference (ragged)"

    print("KERNEL_OK")
</pallas_src>

<mosaic_0001>
module attributes {stable_mosaic.version = 11 : i64} {
  func.func @_cond_embed_kernel(%arg0: i32, %arg1: i32, %arg2: memref<8x1xf32, #tpu.memory_space<vmem>>, %arg3: memref<1x32xf32, #tpu.memory_space<vmem>>, %arg4: memref<8x32xf32, #tpu.memory_space<vmem>>) attributes {dimension_semantics = [#tpu.dimension_semantics<parallel>, #tpu.dimension_semantics<parallel>], iteration_bounds = array<i64: 2, 1>, scalar_prefetch = 0 : i64, scratch_operands = 0 : i64, tpu.core_type = #tpu.core_type<tc>, window_params = [{transform_indices = @transform_0, window_bounds = array<i64: 8, 1>}, {transform_indices = @transform_1, window_bounds = array<i64: 1, 32>}, {transform_indices = @transform_2, window_bounds = array<i64: 8, 32>}]} {
    %c0 = arith.constant 0 : index
    %c0_0 = arith.constant 0 : index
    %0 = vector.load %arg2[%c0, %c0_0] : memref<8x1xf32, #tpu.memory_space<vmem>>, vector<8x1xf32>
    %c0_1 = arith.constant 0 : index
    %c0_2 = arith.constant 0 : index
    %1 = vector.load %arg3[%c0_1, %c0_2] : memref<1x32xf32, #tpu.memory_space<vmem>>, vector<1x32xf32>
    %2 = vector.broadcast %0 : vector<8x1xf32> to vector<8x32xf32>
    %3 = vector.broadcast %1 : vector<1x32xf32> to vector<8x32xf32>
    %4 = arith.mulf %2, %3 : vector<8x32xf32>
    %c0_3 = arith.constant 0 : index
    %c0_4 = arith.constant 0 : index
    %5 = vector.load %arg4[%c0_3, %c0_4] : memref<8x32xf32, #tpu.memory_space<vmem>>, vector<8x32xf32>
    tpu.vector_store %arg4[%c0_3, %c0_4], %4 {strides = array<i32>} : memref<8x32xf32, #tpu.memory_space<vmem>>, vector<8x32xf32>,
    return
  }
  func.func @transform_0(%arg0: i32, %arg1: i32) -> (i32, i32) {
    %c0_i32 = arith.constant 0 : i32
    %c0_i32_0 = arith.constant 0 : i32
    return %arg0, %c0_i32 : i32, i32
  }
  func.func @transform_1(%arg0: i32, %arg1: i32) -> (i32, i32) {
    %c0_i32 = arith.constant 0 : i32
    %c0_i32_0 = arith.constant 0 : i32
    return %c0_i32, %arg1 : i32, i32
  }
  func.func @transform_2(%arg0: i32, %arg1: i32) -> (i32, i32) {
    %c0_i32 = arith.constant 0 : i32
    return %arg0, %arg1 : i32, i32
  }
}

</mosaic_0001>

<bundles_post_ra>
// kernel: tpu_custom_call.1
= control target key start
LH: loop header
LB: loop body
LE: loop exit
PB: predicated region body
PF: predicated region fallthrough
CT: control target
= control target key end

     0   :  { %7 = vsyncpa [#allocation3], 0  ;;  %s560_s0 = inlined_call_operand.vmem [shape: f32[16,1], index: 0, kind: input, shape index: {}]   ;;  %s561_s1 = inlined_call_operand.vmem [shape: f32[1,32], index: 1, kind: input, shape index: {}]   ;;  %s562_s2 = inlined_call_operand.hbm [shape: f32[16,32], index: 2, kind: output, shape index: {}]  }
   0x1   :  { %9 = vsyncpa [#allocation3 + $0x1], 0  ;;  %s445_s9 = smov 0   ;;  %s447_s10 = smov 0  }
   0x2   :  { %s449_s11 = smov 0   ;;  %s451_s12 = smov 0  }
   0x3   :  { %s453_s13 = smov 0   ;;  %s455_s14 = smov 0  }
   0x4 LB: > { %s278_s15 = sadd.s32 4294967295, %s426_s14   ;;  %s279_s16 = sadd.s32 4294967294, %s426_s14   ;;  %s426_s14 = sphi %s455_s14, %s15_s14   ;;  %s422_s13 = sphi %s453_s13, %s569_s13   ;;  %s418_s12 = sphi %s451_s12, %s568_s12   ;;  %s414_s11 = sphi %s449_s11, %s567_s11   ;;  %s410_s10 = sphi %s447_s10, %s566_s10   ;;  %s406_s9 = sphi %s445_s9, %s565_s9  }
   0x5   : > { %s27_s17 = sadd.s32 1, %s422_s13  ;;  %s88_s18 = sadd.s32 1, %s414_s11 }
   0x6   : > { %p29_p0 = scmp.ge.s32.totalorder %s27_s17, 2  ;;  %p98_p1 = scmp.ne.s32.totalorder %s414_s11, %s410_s10 }
   0x7   : > { %p99_p2 = scmp.eq.s32.totalorder %s278_s15, 1  ;;  %p104_p3 = scmp.ne.s32.totalorder %s410_s10, %s406_s9 }
   0x8   : > { %s571_s17 = smov (%p29_p0, %s27_s17), 0  ;;  %p105_p5 = scmp.eq.s32.totalorder %s279_s16, 1 }
   0x9   : > { %p485_p4 = por %p99_p2, %p98_p1  ;;  %s83_s20 = ssub.s32 %s422_s13, %s571_s17 }
   0xa   : > { %p283_p6 = scmp.ge.s32.totalorder %s426_s14, 1  ;;  %p86_p7 = scmp.eq.s32.totalorder %s83_s20, 0 }
   0xb   : > { %p492_p8 = por %p105_p5, %p104_p3  ;;  %p136_p9 = scmp.lt.s32.totalorder %s426_s14, 3 }
   0xc   : > { %s498_s22 = scalar_select %p86_p7, %s414_s11, %s88_s18  }
   0xd   : > { %p137_p10 = pnand %p283_p6, %p136_p9 }
   0xe   : > { %p160_p11 = scmp.lt.s32.totalorder (!%p137_p10), %s418_s12, 1  ;;  %v428_v0 = vmov (!%p137_p10), 0   ;;  %s157_s28 = sand.u32 (!%p137_p10), 1, %s410_s10   ;;  %v286_v2 = vld [vmem:[%s561_s1] ss:$0 sm:$0xff] (!%p137_p10)  ;;  %vm181_vm0 = vcmask (!%p137_p10), 261120  }
   0xf   : > { %140 = sbr.rel (%p137_p10) target bundleno = 171 (0xab), region = 28  ;;  %347 = vset.pattern.permute.xlu0 (!%p137_p10), %v428_v0  ;;  %s284_s29 = sshll.u32 (!%p137_p10), %s157_s28, 3 }
  0x10   : > { %s288_s4 = sshll.u32 (!%p137_p10), %s418_s12, 7  ;;  %s159_s5 = scalar_lea.vmem (!%p137_p10), [#allocation2], %s284_s29 }
  0x11   : > { %s198_s6 = sshll.u32 (!%p137_p10), %s159_s5, 4  ;;  %s513_s15 = scalar_lea.hbm (!%p137_p10), %s562_s2, %s288_s4  ;;  %s515_s6 = int_to_ptr.vmem [resolvable:$true] %s198_s6 }
  0x12   : > { %s184_s16 = scalar_lea.sflag (!%p137_p10), [#allocation3], %s157_s28  ;;  %s348_s18 = scalar_lea.vmem (!%p137_p10), %s515_s6, 128 }
  0x13   : > { %p349_p12 = scmp.ne.s32.totalorder (!%p137_p10), %s515_s6, %s348_s18 }
  0x15   : > { %p350_p13 = pnand (!%p137_p10), %p349_p12, %p485_p4 }
  0x16   : > { %s161_s23 = scalar_select %p160_p11, %s418_s12, 1 }
  0x17   : > { %p351_p0 = pneg %p350_p13  ;;  %s429_s12 = smov [#allocation2]  }
  0x18   : > { %s285_s24 = sshll.u32 %s161_s23, 3  ;;  %s352_s20 = sshll.u32 %s429_s12, 4  ;;  %s353_s20 = int_to_ptr.vmem [resolvable:$false] %s352_s20 }
  0x19   : > { %s163_s27 = scalar_lea.vmem %s560_s0, %s285_s24  ;;  %s354_s23 = scalar_lea.vmem %s353_s20, 256 }
  0x1a   : > { %v167_v1 = vld [vmem:[%s163_s27] sm:$0xff]  ;;  %p355_p1 = scmp.lt.s32.totalorder %s515_s6, %s353_s20  ;;  %p356_p2 = scmp.lt.s32.totalorder %s354_s23, %s348_s18 }
  0x1b   : > { %171 = vperm.xlu0 %347, %v167_v1  }
  0x1c   : > { %p357_p3 = por %p356_p2, %p355_p1 }
  0x1e   : > { %p358_p5 = pnand %p357_p3, %p351_p0 }
  0x9a   : > { %v172_v3 = vpop.permute.xlu0 %171 }
  0x9b   : > { %v180_v4 = vmul.f32 %v286_v2, %v172_v3 }
  0x9d   : > { %182 = vst.msk [vmem:[%s159_s5] sm:$0xff] %vm181_vm0, %v180_v4 }
  0x9e   : > { %361 = shalt.err (!%p358_p5)
}
  0x9f   : > { %s362_s24 = scalar_lea.hbm %s513_s15, 128  ;;  %s366_s27 = scalar_lea.hbm %s562_s2, 256 }
  0xa0   : > { %p363_p6 = scmp.ne.s32.totalorder %s513_s15, %s362_s24  ;;  %p367_p10 = scmp.lt.u32.totalorder %s513_s15, %s562_s2 }
  0xa1   : > { %p368_p11 = scmp.lt.u32.totalorder %s366_s27, %s362_s24  ;;  %p370_p13 = scmp.lt.u32.totalorder %s362_s24, %s513_s15 }
  0xa2   : > { %p364_p7 = pnand %p363_p6, %p485_p4 }
  0xa3   : > { %p369_p12 = por %p368_p11, %p367_p10 }
  0xa4   : > { %p365_p9 = pneg %p364_p7 }
  0xa5   : > { %p371_p0 = por %p370_p13, %p369_p12 }
  0xa7   : > { %p372_p1 = pnand %p371_p0, %p365_p9 }
  0xa9   : > { %375 = shalt.err (!%p372_p1)
}
  0xaa   : > { %291 = dma.vmem_to_hbm [thread:$0]  (%p485_p4), %s515_s6, 128, %s513_s15, %s184_s16  }
  0xab PF: > { %p297_p2 = scmp.ge.s32.totalorder %s426_s14, 2  ;;  %s210_s30 = sand.u32 1, %s406_s9  }
  0xac   : > { %s211_s3 = scalar_lea.sflag [#allocation3], %s210_s30 }
  0xad   : > { %p294_p3 = pnand %p297_p2, %p492_p8 }
  0xaf   : > { %401 = dma.done.wait (!%p294_p3), %s211_s3, 128  }
  0xb0   : > { %403 = vsyncadd (!%p294_p3), %s211_s3, 4294967168  ;;  %s15_s14 = sadd.s32 1, %s426_s14   ;;  %s565_s9 = smov %s410_s10 }
  0xb1   : > { %p12_p5 = scmp.ge.s32.totalorder %s15_s14, 4   ;;  %s566_s10 = smov %s414_s11 }
  0xb2   : > { %s567_s11 = smov %s498_s22  ;;  %s568_s12 = smov %s422_s13 }
  0xb3   : > { %s569_s13 = smov %s571_s17  ;;  %14 = sbr.rel (!%p12_p5) target bundleno = 4 (0x4), region = 66 }
  0xba   :  { %216 = vsyncpa [#allocation3], 1 }
  0xbb   :  { %218 = vsyncpa [#allocation3 + $0x1], 1 }

</bundles_post_ra>
